<compile_context>
chip_gen: v7x
topology: tpu7x:2x2x1
jax: 0.10.0
libtpu: 0.0.40
codegen_flags: <defaults>
</compile_context>

<pallas_src>
from functools import partial

import jax
import jax.numpy as jnp
from jax.experimental import pallas as pl
from jax.experimental.pallas import tpu as pltpu

_LANES = 128


def perceptron_kernel(w_ref, b_ref, xt_ref, o_ref):
    # w_ref: SMEM (2,)   b_ref: SMEM (1,)
    # xt_ref: VMEM (2, R_TILE, 128)   o_ref: VMEM (R_TILE, 128)
    w0 = w_ref[0]
    w1 = w_ref[1]
    bias = b_ref[0]

    # Pure VPU: two multiplies + two adds over dense (R_TILE, 128) planes.
    z = xt_ref[0] * w0 + xt_ref[1] * w1 + bias

    # EUP-friendly, numerically robust sigmoid (single transcendental).
    o_ref[...] = 0.5 * (jnp.tanh(0.5 * z) + 1.0)


@partial(jax.jit, static_argnames=("rows_per_tile",))
def perceptron_forward(x, w, b, *, rows_per_tile=4096):
    """x: (B, 2) f32, w: (1, 2) f32, b: (1,) f32 -> (B, 1) f32.

    rows_per_tile=4096 -> 512K samples / grid step (~12 MiB double-buffered),
    sized to fit v5e's 16 MiB default scoped VMEM and to leave >=2 grid steps
    for v7x's two TensorCores on large batches.
    """
    B = x.shape[0]

    # Rows of 128 lanes needed for the batch; tile rows are a multiple of 8
    # sublanes and never larger than (rounded-up) need.
    rows_needed = -(-B // _LANES)
    r_tile = min(rows_per_tile, ((rows_needed + 7) // 8) * 8)
    r_tile = max(r_tile, 8)
    rows_pad = ((rows_needed + r_tile - 1) // r_tile) * r_tile
    b_pad = rows_pad * _LANES

    xf = x.astype(jnp.float32)
    # Planar layout: (2, rows_pad, 128) with sample index = row*128 + lane.
    xt = jnp.pad(xf, ((0, b_pad - B), (0, 0))).T.reshape(2, rows_pad, _LANES)
    w_flat = w.astype(jnp.float32).reshape(2)
    b_flat = b.astype(jnp.float32).reshape(1)

    y_planes = pl.pallas_call(
        perceptron_kernel,
        out_shape=jax.ShapeDtypeStruct((rows_pad, _LANES), jnp.float32),
        grid=(rows_pad // r_tile,),
        in_specs=[
            pl.BlockSpec(memory_space=pltpu.MemorySpace.SMEM),   # w (2,)
            pl.BlockSpec(memory_space=pltpu.MemorySpace.SMEM),   # b (1,)
            pl.BlockSpec((2, r_tile, _LANES), lambda i: (0, i, 0)),
        ],
        out_specs=pl.BlockSpec((r_tile, _LANES), lambda i: (i, 0)),
        compiler_params=pltpu.CompilerParams(
            dimension_semantics=("parallel",),
        ),
    )(w_flat, b_flat, xt)

    # Back to PyTorch's (B, 1) convention; strip batch padding.
    # (Padded lanes hold sigmoid(bias) by design and are discarded here.)
    return y_planes.reshape(b_pad)[:B].reshape(B, 1)


if __name__ == "__main__":
    key = jax.random.PRNGKey(0)
    kx, kw, kb = jax.random.split(key, 3)

    batch = 8
    in_features, out_features = 2, 1

    # Deterministic synthetic parameters (shapes match torch.nn.Linear(2, 1)).
    x = jax.random.normal(kx, (batch, in_features), dtype=jnp.float32)
    w = jax.random.normal(kw, (out_features, in_features), dtype=jnp.float32) * 0.5
    b = jax.random.normal(kb, (out_features,), dtype=jnp.float32) * 0.1

    y = perceptron_forward(x, w, b)
    y = jax.block_until_ready(y)

    # Reference check against plain JAX.
    y_ref = jax.nn.sigmoid(x @ w.T + b)
    assert y.shape == (batch, out_features)
    assert jnp.allclose(y, y_ref, atol=1e-5, rtol=1e-5)

    print("KERNEL_OK")
</pallas_src>

<mosaic_0001>
module attributes {stable_mosaic.version = 11 : i64} {
  func.func @perceptron_kernel(%arg0: i32, %arg1: memref<2xf32, #tpu.memory_space<smem>>, %arg2: memref<1xf32, #tpu.memory_space<smem>>, %arg3: memref<2x8x128xf32, #tpu.memory_space<vmem>>, %arg4: memref<8x128xf32, #tpu.memory_space<vmem>>) attributes {dimension_semantics = [#tpu.dimension_semantics<parallel>], iteration_bounds = array<i64: 1>, scalar_prefetch = 0 : i64, scratch_operands = 0 : i64, tpu.core_type = #tpu.core_type<tc>, window_params = [{transform_indices = @transform_0, window_bounds = array<i64: 2>}, {transform_indices = @transform_1, window_bounds = array<i64: 1>}, {transform_indices = @transform_2, window_bounds = array<i64: 2, 8, 128>}, {transform_indices = @transform_3, window_bounds = array<i64: 8, 128>}]} {
    %c0 = arith.constant 0 : index
    %0 = memref.load %arg1[%c0] : memref<2xf32, #tpu.memory_space<smem>>
    %c1 = arith.constant 1 : index
    %1 = memref.load %arg1[%c1] : memref<2xf32, #tpu.memory_space<smem>>
    %c0_0 = arith.constant 0 : index
    %2 = memref.load %arg2[%c0_0] : memref<1xf32, #tpu.memory_space<smem>>
    %c0_1 = arith.constant 0 : index
    %c0_2 = arith.constant 0 : index
    %c0_3 = arith.constant 0 : index
    %3 = vector.load %arg3[%c0_1, %c0_2, %c0_3] : memref<2x8x128xf32, #tpu.memory_space<vmem>>, vector<1x8x128xf32>
    %4 = vector.shape_cast %3 : vector<1x8x128xf32> to vector<8x128xf32>
    %5 = vector.broadcast %0 : f32 to vector<8x128xf32>
    %6 = arith.mulf %4, %5 : vector<8x128xf32>
    %c1_4 = arith.constant 1 : index
    %c0_5 = arith.constant 0 : index
    %c0_6 = arith.constant 0 : index
    %7 = vector.load %arg3[%c1_4, %c0_5, %c0_6] : memref<2x8x128xf32, #tpu.memory_space<vmem>>, vector<1x8x128xf32>
    %8 = vector.shape_cast %7 : vector<1x8x128xf32> to vector<8x128xf32>
    %9 = vector.broadcast %1 : f32 to vector<8x128xf32>
    %10 = arith.mulf %8, %9 : vector<8x128xf32>
    %11 = arith.addf %6, %10 : vector<8x128xf32>
    %12 = vector.broadcast %2 : f32 to vector<8x128xf32>
    %13 = arith.addf %11, %12 : vector<8x128xf32>
    %cst = arith.constant 5.000000e-01 : f32
    %14 = vector.broadcast %cst : f32 to vector<8x128xf32>
    %15 = arith.mulf %14, %13 : vector<8x128xf32>
    %16 = math.tanh %15 : vector<8x128xf32>
    %cst_7 = arith.constant 1.000000e+00 : f32
    %17 = vector.broadcast %cst_7 : f32 to vector<8x128xf32>
    %18 = arith.addf %16, %17 : vector<8x128xf32>
    %cst_8 = arith.constant 5.000000e-01 : f32
    %19 = vector.broadcast %cst_8 : f32 to vector<8x128xf32>
    %20 = arith.mulf %19, %18 : vector<8x128xf32>
    %c0_9 = arith.constant 0 : index
    %c0_10 = arith.constant 0 : index
    %21 = vector.load %arg4[%c0_9, %c0_10] : memref<8x128xf32, #tpu.memory_space<vmem>>, vector<8x128xf32>
    tpu.vector_store %arg4[%c0_9, %c0_10], %20 {strides = array<i32>} : memref<8x128xf32, #tpu.memory_space<vmem>>, vector<8x128xf32>,
    return
  }
  func.func @transform_0(%arg0: i32) -> i32 {
    %c0_i32 = arith.constant 0 : i32
    %c0_i32_0 = arith.constant 0 : i32
    return %c0_i32 : i32
  }
  func.func @transform_1(%arg0: i32) -> i32 {
    %c0_i32 = arith.constant 0 : i32
    %c0_i32_0 = arith.constant 0 : i32
    return %c0_i32 : i32
  }
  func.func @transform_2(%arg0: i32) -> (i32, i32, i32) {
    %c0_i32 = arith.constant 0 : i32
    %c0_i32_0 = arith.constant 0 : i32
    %c0_i32_1 = arith.constant 0 : i32
    return %c0_i32, %arg0, %c0_i32_0 : i32, i32, i32
  }
  func.func @transform_3(%arg0: i32) -> (i32, i32) {
    %c0_i32 = arith.constant 0 : i32
    %c0_i32_0 = arith.constant 0 : i32
    return %arg0, %c0_i32 : i32, i32
  }
}

</mosaic_0001>

<bundles_post_ra>
// kernel: perceptron_forward.1
= control target key start
LH: loop header
LB: loop body
LE: loop exit
PB: predicated region body
PF: predicated region fallthrough
CT: control target
= control target key end

     0   :  { %9 = vsyncpa [#allocation4], 0  ;;  %s106_s0 = inlined_call_operand.vmem [shape: f32[2], index: 0, kind: input, shape index: {}]   ;;  %s107_s1 = inlined_call_operand.<no memory space> [shape: f32[1], index: 1, kind: input, shape index: {}]   ;;  %s108_s2 = inlined_call_operand.vmem [shape: f32[2,8,128], index: 2, kind: input, shape index: {}]   ;;  %s109_s3 = inlined_call_operand.vmem [shape: f32[8,128], index: 3, kind: output, shape index: {}]  }
   0x1   :  { %s16_s14 = sshll.u32 %s106_s0, 4  ;;  %s17_s14 = int_to_ptr.vmem [resolvable:$true] %s16_s14 }
   0x2   :  { %s56_s15 = scalar_lea.vmem %s17_s14, 16  ;;  %p61_p1 = scmp.lt.s32.totalorder %s17_s14, %s17_s14 }
   0x3   :  { %p57_p0 = scmp.ne.s32.totalorder %s17_s14, %s56_s15  ;;  %p62_p2 = scmp.lt.s32.totalorder %s56_s15, %s56_s15 }
   0x5   :  { %p63_p3 = por %p62_p2, %p61_p1 }
   0x7   :  { %p64_p4 = pnand %p63_p3, %p57_p0 }
   0x9   :  { %67 = shalt.err (!%p64_p4)
}
   0xa   :  { %s70_s16 = smov [#allocation3]  }
   0xb   :  { %19 = dma.vmem_to_smem %s17_s14, 16, %s70_s16, [#allocation4]  }
   0xc   :  { %68 = dma.done.wait [#allocation4], 16  }
   0xd   :  { %69 = vsyncadd [#allocation4], 4294967280 }
   0xe   :  { %27 = sfence }
   0xf   :  { %s28_s17 = sld [smem:[#allocation3]]  ;;  %s51_s18 = sld [smem:[#allocation3 + $0x1]]  ;;  %v31_v0 = vld [vmem:[%s108_s2] sm:$0xff]  ;;  %v52_v1 = vld [vmem:[%s108_s2 + $0x8] sm:$0xff]  ;;  %v39_v6 = vstv %s107_s1 }
  0x15   :  { %v32_v2 = vstv %s28_s17  ;;  %v36_v3 = vstv %s51_s18 }
  0x16   :  { %v33_v4 = vmul.f32 %v32_v2, %v31_v0  ;;  %v37_v5 = vmul.f32 %v52_v1, %v36_v3 }
  0x18   :  { %v38_v7 = vadd.f32 %v37_v5, %v33_v4 }
  0x1a   :  { %v40_v8 = vadd.f32 %v39_v6, %v38_v7 }
  0x1c   :  { %v41_v9 = vmul.f32 0.5, %v40_v8 }
  0x1e   :  { %54 = vtanh.f32 %v41_v9 }
  0x28   :  { %v55_v10 = vpop.eup %54 }
  0x29   :  { %v43_v11 = vadd.f32 1.0, %v55_v10 }
  0x2b   :  { %v44_v12 = vmul.f32 0.5, %v43_v11 }
  0x2d   :  { %45 = vst [vmem:[%s109_s3] sm:$0xff] %v44_v12 }
  0x2e   :  { %50 = vsyncpa [#allocation4], 1 }

</bundles_post_ra>
